<compile_context>
chip_gen: v5e
topology: v5e:2x2
jax: 0.10.0
libtpu: 0.0.40
codegen_flags: <defaults>
</compile_context>

<pallas_src>
import functools

import jax
import jax.numpy as jnp
from jax import lax
from jax.experimental import pallas as pl
from jax.experimental.pallas import tpu as pltpu


_SUBLANE = 8


def _cdiv(a, b):
    return -(-a // b)


def _default_vmem_budget():
    """~65% of per-core physical VMEM (v7x: ~41 MiB, v5e/v6e: ~83 MiB)."""
    cap = None
    try:
        cap = getattr(pltpu.get_tpu_info(), "vmem_capacity_bytes", None)
    except Exception:
        cap = None
    if not cap:
        cap = 64 << 20  # conservative (v7x per-TC) fallback
    return int(cap * 0.65)


# --------------------------------------------------------------------------
# Kernels
# --------------------------------------------------------------------------
def _attn_kernel(q_ref, k_ref, o_ref, *, approx_recip):
    """One (batch-tile, q-tile) block: energy = q @ k^T over H, softmax(Tk)."""
    q = q_ref[...]                      # (bb, tq, H)
    k = k_ref[...]                      # (bb, Tk, H)

    # Contract on H directly (batch dim 0 <-> 0); MXU consumes the transposed
    # contraction natively -- no explicit k.T / XLU transpose.
    energy = lax.dot_general(
        q, k,
        dimension_numbers=(((2,), (2,)), ((0,), (0,))),
        preferred_element_type=jnp.float32,
    )                                   # (bb, tq, Tk) f32

    # Numerically-stable softmax over the last dim (arithmetic in f32).
    m = jnp.max(energy, axis=-1, keepdims=True)
    e = jnp.exp(energy - m)                         # EUP
    s = jnp.sum(e, axis=-1, keepdims=True)
    if approx_recip:
        p = e * pl.reciprocal(s, approx=True)       # EUP slot, frees VALU
    else:
        p = e / s                                   # exact path (training)
    o_ref[...] = p.astype(o_ref.dtype)


def _attn_decode_kernel(q_ref, k_ref, o_ref, *, approx_recip):
    """Tq == 1 fast path: batches packed on sublanes of a 2-D output block."""
    q = q_ref[...]                      # (bb, H)
    k = k_ref[...]                      # (bb, Tk, H)
    energy = lax.dot_general(
        q, k,
        dimension_numbers=(((1,), (2,)), ((0,), (0,))),
        preferred_element_type=jnp.float32,
    )                                   # (bb, Tk) f32
    m = jnp.max(energy, axis=-1, keepdims=True)
    e = jnp.exp(energy - m)
    s = jnp.sum(e, axis=-1, keepdims=True)
    if approx_recip:
        p = e * pl.reciprocal(s, approx=True)
    else:
        p = e / s
    o_ref[...] = p.astype(o_ref.dtype)


# --------------------------------------------------------------------------
# Wrapper
# --------------------------------------------------------------------------
def attn_dot(hidden, encoder_outputs, *, compute_dtype=None, out_dtype=None,
             vmem_budget_bytes=None, approx_recip=True):
    """Pallas equivalent of Attn(method='dot').forward.

    hidden:          [B, Tq, H]
    encoder_outputs: [B, Tk, H]
    returns:         [B, Tq, Tk]  (softmax over last dim)

    compute_dtype: optional cast applied in the wrapper so the HBM->VMEM DMAs
                   carry the narrow dtype (best done upstream in the model).
    out_dtype:     defaults to the dtype the inputs were passed in (so bf16
                   inputs give bf16 probabilities -> half the HBM write bytes).
    """
    B, Tq, H = hidden.shape
    Bk, Tk, Hk = encoder_outputs.shape
    assert B == Bk and H == Hk

    orig_dtype = hidden.dtype
    if compute_dtype is not None and hidden.dtype != compute_dtype:
        # Cast BEFORE pallas_call so the input DMAs move the narrow dtype.
        hidden = hidden.astype(compute_dtype)
        encoder_outputs = encoder_outputs.astype(compute_dtype)
    if out_dtype is None:
        out_dtype = orig_dtype

    in_el = jnp.dtype(hidden.dtype).itemsize
    out_el = jnp.dtype(out_dtype).itemsize

    if vmem_budget_bytes is None:
        vmem_budget_bytes = _default_vmem_budget()
    budget = vmem_budget_bytes

    # Keep >=2 blocks along batch on non-trivial problems so
    # dimension_semantics=("parallel", ...) can shard across v7x's two TCs.
    out_total_bytes = B * Tq * Tk * out_el
    force_split = (B >= 2) and (out_total_bytes >= (512 << 10))

    def ws_general(bb, tq):
        # 2x for double-buffered in/out blocks + f32 energy/exp temporaries.
        return (2 * bb * (tq * H * in_el + Tk * H * in_el + tq * Tk * out_el)
                + 2 * bb * tq * Tk * 4)

    kernel_kwargs = dict(approx_recip=approx_recip)

    # ---------------- Decode fast path (Tq == 1) ----------------------------
    if Tq == 1:
        per_b = ws_general(1, 1)
        bb_d = min(B, max(1, budget // max(per_b, 1)))
        if force_split:
            bb_d = min(bb_d, _cdiv(B, 2))
        if bb_d != B:
            bb_d = (bb_d // _SUBLANE) * _SUBLANE   # sublane-dense output block
        if bb_d == B or bb_d >= _SUBLANE:
            vmem_limit = max(budget, ws_general(bb_d, 1)) + (8 << 20)
            q2 = hidden.reshape(B, H)
            out2 = pl.pallas_call(
                functools.partial(_attn_decode_kernel, **kernel_kwargs),
                out_shape=jax.ShapeDtypeStruct((B, Tk), out_dtype),
                grid_spec=pltpu.PrefetchScalarGridSpec(
                    num_scalar_prefetch=0,
                    grid=(_cdiv(B, bb_d),),
                    in_specs=[
                        pl.BlockSpec((bb_d, H), lambda b: (b, 0)),
                        pl.BlockSpec((bb_d, Tk, H), lambda b: (b, 0, 0)),
                    ],
                    out_specs=pl.BlockSpec((bb_d, Tk), lambda b: (b, 0)),
                ),
                compiler_params=pltpu.CompilerParams(
                    dimension_semantics=("parallel",),
                    vmem_limit_bytes=vmem_limit,
                ),
            )(q2, encoder_outputs)
            return out2.reshape(B, 1, Tk)
        # else: fall through to the general 3-D path.

    # ---------------- General path: tile selection ---------------------------
    per_batch = ws_general(1, Tq)
    if per_batch <= budget:
        bb = min(B, max(1, budget // per_batch))
        if force_split:
            bb = min(bb, _cdiv(B, 2))
        bb = max(bb, 1)
        tq_blk = Tq
    else:
        bb = 1
        # Per-q-row cost with bb=1 (K block counted once, double-buffered).
        denom = 2 * (H * in_el + Tk * out_el) + 2 * Tk * 4
        tq_max = (budget - 2 * Tk * H * in_el) // denom
        if tq_max >= 256:
            tq_blk = (tq_max // 256) * 256        # MXU-friendly on v6e/v7x
        elif tq_max >= 128:
            tq_blk = 128                          # MXU edge on v5e
        elif tq_max >= _SUBLANE:
            tq_blk = (tq_max // _SUBLANE) * _SUBLANE
        else:
            # TODO(synk): online-softmax Tk-tiled fallback (flash-style) for
            # very long Tk where even the whole-K double buffer exceeds VMEM;
            # also consider single-buffering K (pl.Buffered(1)) when tight.
            tq_blk = _SUBLANE
        tq_blk = max(1, min(tq_blk, Tq))

    vmem_limit = max(budget, ws_general(bb, tq_blk)) + (8 << 20)
    grid = (_cdiv(B, bb), _cdiv(Tq, tq_blk))

    out = pl.pallas_call(
        functools.partial(_attn_kernel, **kernel_kwargs),
        out_shape=jax.ShapeDtypeStruct((B, Tq, Tk), out_dtype),
        grid_spec=pltpu.PrefetchScalarGridSpec(
            num_scalar_prefetch=0,
            grid=grid,
            in_specs=[
                pl.BlockSpec((bb, tq_blk, H), lambda b, i: (b, i, 0)),
                # K block is constant across the q-tile axis, so its DMA is not
                # re-issued between q tiles of the same batch tile.
                pl.BlockSpec((bb, Tk, H), lambda b, i: (b, 0, 0)),
            ],
            out_specs=pl.BlockSpec((bb, tq_blk, Tk), lambda b, i: (b, i, 0)),
        ),
        compiler_params=pltpu.CompilerParams(
            dimension_semantics=("parallel", "parallel"),
            vmem_limit_bytes=vmem_limit,
        ),
    )(hidden, encoder_outputs)
    return out


if __name__ == "__main__":
    # Small shapes consistent with the module: batch=2, seq=8, hidden=32.
    B, Tq, Tk, H = 2, 8, 8, 32
    key = jax.random.PRNGKey(0)
    k1, k2 = jax.random.split(key)
    hidden = jax.random.normal(k1, (B, Tq, H), dtype=jnp.float32)
    encoder_outputs = jax.random.normal(k2, (B, Tk, H), dtype=jnp.float32)

    # Reference (same math as the PyTorch module).
    energy_ref = jnp.einsum("bqh,bkh->bqk", hidden, encoder_outputs)
    ref = jax.nn.softmax(energy_ref, axis=-1)

    # 1) f32, approximate-reciprocal softmax normalization.
    out = attn_dot(hidden, encoder_outputs)
    jax.block_until_ready(out)
    assert out.shape == (B, Tq, Tk)
    assert jnp.allclose(out, ref, atol=2e-3, rtol=2e-3), float(
        jnp.max(jnp.abs(out - ref)))

    # 2) Exact-divide softmax (for loss/gradient consumers).
    out_exact = attn_dot(hidden, encoder_outputs, approx_recip=False)
    jax.block_until_ready(out_exact)
    assert jnp.allclose(out_exact, ref, atol=1e-5, rtol=1e-5)

    # 3) bf16 end-to-end: bf16 input DMAs and bf16 probability stores
    #    (f32 MXU accumulation + f32 softmax preserved inside the kernel).
    out_bf16 = attn_dot(hidden.astype(jnp.bfloat16),
                        encoder_outputs.astype(jnp.bfloat16))
    jax.block_until_ready(out_bf16)
    assert out_bf16.shape == (B, Tq, Tk) and out_bf16.dtype == jnp.bfloat16
    assert jnp.allclose(out_bf16.astype(jnp.float32), ref, atol=8e-2)

    # 4) Decode-shaped fast path (Tq == 1): batches packed on sublanes.
    hidden1 = hidden[:, :1, :]
    out_dec = attn_dot(hidden1, encoder_outputs)
    jax.block_until_ready(out_dec)
    ref_dec = jax.nn.softmax(
        jnp.einsum("bqh,bkh->bqk", hidden1, encoder_outputs), axis=-1)
    assert out_dec.shape == (B, 1, Tk)
    assert jnp.allclose(out_dec, ref_dec, atol=2e-3, rtol=2e-3)

    print("KERNEL_OK")
</pallas_src>

<mosaic_0001>
module attributes {stable_mosaic.version = 11 : i64} {
  func.func @_attn_kernel(%arg0: i32, %arg1: i32, %arg2: memref<2x8x32xf32, #tpu.memory_space<vmem>>, %arg3: memref<2x8x32xf32, #tpu.memory_space<vmem>>, %arg4: memref<2x8x8xf32, #tpu.memory_space<vmem>>) attributes {dimension_semantics = [#tpu.dimension_semantics<parallel>, #tpu.dimension_semantics<parallel>], iteration_bounds = array<i64: 1, 1>, scalar_prefetch = 0 : i64, scratch_operands = 0 : i64, tpu.core_type = #tpu.core_type<tc>, window_params = [{transform_indices = @transform_0, window_bounds = array<i64: 2, 8, 32>}, {transform_indices = @transform_1, window_bounds = array<i64: 2, 8, 32>}, {transform_indices = @transform_2, window_bounds = array<i64: 2, 8, 8>}]} {
    %c0 = arith.constant 0 : index
    %c0_0 = arith.constant 0 : index
    %c0_1 = arith.constant 0 : index
    %0 = vector.load %arg2[%c0, %c0_0, %c0_1] : memref<2x8x32xf32, #tpu.memory_space<vmem>>, vector<2x8x32xf32>
    %c0_2 = arith.constant 0 : index
    %c0_3 = arith.constant 0 : index
    %c0_4 = arith.constant 0 : index
    %1 = vector.load %arg3[%c0_2, %c0_3, %c0_4] : memref<2x8x32xf32, #tpu.memory_space<vmem>>, vector<2x8x32xf32>
    %cst = arith.constant dense<0.000000e+00> : vector<2x8x8xf32>
    %2 = tpu.matmul %0, %1, %cst {dimension_numbers = #tpu.dot_dimension_numbers<[2], [2], [1], [1], [0, 0, 0, 1, 1, 1], [0], [0]>} : vector<2x8x32xf32>, vector<2x8x32xf32>, vector<2x8x8xf32> -> vector<2x8x8xf32>
    %cst_5 = arith.constant dense<0xFF800000> : vector<2x8xf32>
    %3 = vector.multi_reduction <maximumf>, %2, %cst_5 [2] : vector<2x8x8xf32> to vector<2x8xf32>
    %4 = vector.shape_cast %3 : vector<2x8xf32> to vector<2x8x1xf32>
    %5 = vector.broadcast %4 : vector<2x8x1xf32> to vector<2x8x8xf32>
    %6 = arith.subf %2, %5 : vector<2x8x8xf32>
    %7 = math.exp %6 : vector<2x8x8xf32>
    %cst_6 = arith.constant dense<0.000000e+00> : vector<2x8xf32>
    %8 = vector.multi_reduction <add>, %7, %cst_6 [2] : vector<2x8x8xf32> to vector<2x8xf32>
    %9 = vector.shape_cast %8 : vector<2x8xf32> to vector<2x8x1xf32>
    %10 = tpu.reciprocal %9 {approx = true} : vector<2x8x1xf32> -> vector<2x8x1xf32>
    %11 = vector.broadcast %10 : vector<2x8x1xf32> to vector<2x8x8xf32>
    %12 = arith.mulf %7, %11 : vector<2x8x8xf32>
    %c0_7 = arith.constant 0 : index
    %c0_8 = arith.constant 0 : index
    %c0_9 = arith.constant 0 : index
    %13 = vector.load %arg4[%c0_7, %c0_8, %c0_9] : memref<2x8x8xf32, #tpu.memory_space<vmem>>, vector<2x8x8xf32>
    tpu.vector_store %arg4[%c0_7, %c0_8, %c0_9], %12 {strides = array<i32>} : memref<2x8x8xf32, #tpu.memory_space<vmem>>, vector<2x8x8xf32>,
    return
  }
  func.func @transform_0(%arg0: i32, %arg1: i32) -> (i32, i32, i32) {
    %c0_i32 = arith.constant 0 : i32
    %c0_i32_0 = arith.constant 0 : i32
    return %arg0, %arg1, %c0_i32 : i32, i32, i32
  }
  func.func @transform_1(%arg0: i32, %arg1: i32) -> (i32, i32, i32) {
    %c0_i32 = arith.constant 0 : i32
    %c0_i32_0 = arith.constant 0 : i32
    %c0_i32_1 = arith.constant 0 : i32
    return %arg0, %c0_i32, %c0_i32_0 : i32, i32, i32
  }
  func.func @transform_2(%arg0: i32, %arg1: i32) -> (i32, i32, i32) {
    %c0_i32 = arith.constant 0 : i32
    %c0_i32_0 = arith.constant 0 : i32
    return %arg0, %arg1, %c0_i32 : i32, i32, i32
  }
}

</mosaic_0001>

<bundles_post_ra>
// kernel: tpu_custom_call.1
= control target key start
LH: loop header
LB: loop body
LE: loop exit
PB: predicated region body
PF: predicated region fallthrough
CT: control target
= control target key end

     0   :  { %7 = vsyncpa [#allocation3], 0  ;;  %s285_s0 = inlined_call_operand.hbm [shape: f32[2,8,32], index: 0, kind: input, shape index: {}]   ;;  %s286_s1 = inlined_call_operand.hbm [shape: f32[2,8,32], index: 1, kind: input, shape index: {}]   ;;  %s287_s2 = inlined_call_operand.hbm [shape: f32[2,8,8], index: 2, kind: output, shape index: {}]  }
   0x1   :  { %8 = vsyncpa [#allocation6], 0 }
   0x2   :  { %9 = vsyncpa [#allocation4], 0  ;;  %s14_s11 = sshll.u32 %s285_s0, 4  ;;  %s241_s12 = smov [#allocation2]   ;;  %s15_s11 = int_to_ptr.hbm [resolvable:$true] %s14_s11 }
   0x3   :  { %s16_s13 = sshll.u32 %s241_s12, 4  ;;  %s27_s16 = sshll.u32 %s286_s1, 4  ;;  %s17_s13 = int_to_ptr.vmem [resolvable:$true] %s16_s13  ;;  %s28_s16 = int_to_ptr.hbm [resolvable:$true] %s27_s16 }
   0x4   :  { %s242_s17 = smov 128   ;;  %s243_s18 = smov 8  }
   0x5   :  { %22 = dma.hbm_to_vmem [thread:$0]  %s15_s11, 256, %s17_s13, [#allocation3], %s242_s17, %s242_s17, %s243_s18  }
   0x6   :  { %s244_s19 = smov [#allocation5]  }
   0x7   :  { %s29_s20 = sshll.u32 %s244_s19, 4  ;;  %s30_s20 = int_to_ptr.vmem [resolvable:$true] %s29_s20 }
   0x8   :  { %35 = dma.hbm_to_vmem [thread:$0]  %s28_s16, 256, %s30_s20, [#allocation6], %s242_s17, %s242_s17, %s243_s18  }
   0x9   :  { %235 = dma.done.wait [#allocation3], 256  }
   0xa   :  { %236 = vsyncadd [#allocation3], 4294967040 }
   0xb   :  { %237 = dma.done.wait [#allocation6], 256  }
   0xc   :  { %238 = vsyncadd [#allocation6], 4294967040  ;;  %vm48_vm0 = vcmask 261120   ;;  %v46_v0 = vld [vmem:[#allocation5] sm:$0xff]  ;;  %v47_v1 = vld [vmem:[#allocation5 + $0x8] sm:$0xff]  ;;  %vm101_vm1 = vcmask 64512  }
   0xd   :  { %146 = vmatpush.xpose.msk.msra.mxu0 %vm48_vm0, %v46_v0  ;;  %v44_v2 = vld [vmem:[#allocation2] sm:$0xff]  ;;  %148 = vmatpush.xpose.msk.msra.mxu1 %vm48_vm0, %v47_v1  ;;  %v45_v3 = vld [vmem:[#allocation2 + $0x8] sm:$0xff]  ;;  %s245_s0 = smov [#allocation7]   ;;  %s132_s23 = sshll.u32 %s287_s2, 4  ;;  %s133_s23 = int_to_ptr.hbm [resolvable:$true] %s132_s23 }
   0xe   :  { %s130_s1 = sshll.u32 %s245_s0, 4  ;;  %s131_s1 = int_to_ptr.vmem [resolvable:$true] %s130_s1 }
  0x10   :  { %147 = vmatmul.msk.f32.vlgmr.msra.gmra.mxu0 %vm48_vm0, %v44_v2  ;;  %149 = vmatmul.msk.f32.vlgmr.msra.gmra.mxu1 %vm48_vm0, %v45_v3 }
  0x8d   :  { %v72_v4 = vpop.f32.mrf.mxu0  ;;  %v98_v6 = vpop.f32.mrf.mxu1 }
  0x8e   :  { %v102_v5 = vsel %vm101_vm1, %v72_v4, -inf  ;;  %v105_v7 = vsel %vm101_vm1, %v98_v6, -inf }
  0x8f   :  { %103 = vmax.xlane.f32.xlu0 %v102_v5 }
  0x97   :  { %106 = vmax.xlane.f32.xlu0 %v105_v7 }
 0x102   :  { %v104_v8 = vpop.xlane.xlu0 %103 }
 0x103   :  { %v108_v9 = vsub.f32 %v72_v4, %v104_v8 }
 0x105   :  { %v110_v10 = vmul.f32 1.442695, %v108_v9 }
 0x107   :  { %155 = vpow2.f32 %v110_v10 }
 0x10a   :  { %v107_v11 = vpop.xlane.xlu0 %106 }
 0x10b   :  { %v109_v12 = vsub.f32 %v98_v6, %v107_v11 }
 0x10d   :  { %v156_v13 = vpop.eup %155  ;;  %v112_v14 = vmul.f32 1.442695, %v109_v12 }
 0x10e   :  { %v114_v15 = vsel %vm101_vm1, %v156_v13, 0.0 }
 0x10f   :  { %157 = vpow2.f32 %v112_v14  ;;  %115 = vadd.xlane.f32.xlu1 %v114_v15 }
 0x115   :  { %v158_v16 = vpop.eup %157 }
 0x116   :  { %v117_v17 = vsel %vm101_vm1, %v158_v16, 0.0 }
 0x117   :  { %118 = vadd.xlane.f32.xlu1 %v117_v17 }
 0x182   :  { %v116_v18 = vpop.xlane.xlu1 %115 }
 0x183   :  { %159 = vrcp.f32 %v116_v18 }
 0x189   :  { %v160_v19 = vpop.eup %159 }
 0x18a   :  { %v122_v20 = vmul.f32 %v160_v19, %v156_v13  ;;  %v119_v21 = vpop.xlane.xlu1 %118 }
 0x18b   :  { %161 = vrcp.f32 %v119_v21 }
 0x18c   :  { %124 = vst.msk [vmem:[#allocation7] sm:$0xff] %vm101_vm1, %v122_v20 }
 0x191   :  { %v162_v22 = vpop.eup %161 }
 0x192   :  { %v123_v23 = vmul.f32 %v162_v22, %v158_v16 }
 0x194   :  { %125 = vst.msk [vmem:[#allocation7 + $0x8] sm:$0xff] %vm101_vm1, %v123_v23 }
 0x195   :  { %138 = dma.vmem_to_hbm [thread:$0]  %s131_s1, 256, %s133_s23, [#allocation4], %s242_s17, %s242_s17, %s243_s18  }
 0x196   :  { %239 = dma.done.wait [#allocation4], 256  }
 0x197   :  { %240 = vsyncadd [#allocation4], 4294967040 }
 0x198   :  { %143 = vsyncpa [#allocation3], 1 }
 0x199   :  { %144 = vsyncpa [#allocation6], 1 }
 0x19a   :  { %145 = vsyncpa [#allocation4], 1 }

</bundles_post_ra>
